<compile_context>
chip_gen: v5e
topology: v5e:2x2
jax: 0.10.0
libtpu: 0.0.40
codegen_flags: <defaults>
</compile_context>

<pallas_src>
import functools
import math

import jax
import jax.numpy as jnp
from jax.experimental import pallas as pl
from jax.experimental.pallas import tpu as pltpu

LANE = 128  # required lane multiple; 256 also fully fills the v6e/v7x 2x256x256 MXU


def _round_up(x, m):
    return ((x + m - 1) // m) * m


def _apply_activation(y, act, lrelu_slope):
    if act == "relu":
        return jnp.maximum(y, 0.0)
    if act == "lrelu":
        return jnp.where(y > 0.0, y, lrelu_slope * y)
    if act == "tanh":
        return jnp.tanh(y)
    if act == "sigmoid":
        return jax.nn.sigmoid(y)
    if act == "none":
        return y
    raise ValueError(f"unknown activation {act}")


# ----------------------------------------------------------------------------
# Fused multi-layer Linear + activation Pallas kernel
# ----------------------------------------------------------------------------
def _fused_dae_kernel(x_ref, *refs, activations, lrelu_slope):
    # refs = (w0, b0, w1, b1, ..., w_{L-1}, b_{L-1}, o_ref)
    o_ref = refs[-1]
    param_refs = refs[:-1]

    h = x_ref[...].astype(jnp.float32)
    for li, act in enumerate(activations):
        w = param_refs[2 * li][...]        # (Kp, Np) bf16, resident in VMEM
        b = param_refs[2 * li + 1][...]    # (1, Np) f32, resident in VMEM
        y = jnp.dot(h.astype(jnp.bfloat16), w,
                    preferred_element_type=jnp.float32) + b
        h = _apply_activation(y, act, lrelu_slope)
    o_ref[...] = h.astype(o_ref.dtype)


def _pad_params(params, lane=LANE):
    """bf16 weights / f32 biases with feature dims zero-padded to multiples of `lane`.

    The first layer keeps K = input_dim (so x is not padded); every layer's N dim
    and every subsequent layer's K dim are padded.  Padded ROWS of each weight are
    zero, so act(0) values living in padded hidden columns (sigmoid -> 0.5, etc.)
    never contribute to real outputs.
    """
    padded = []
    for li, (w_t, b) in enumerate(params):
        k, n = w_t.shape
        k_pad = k if li == 0 else _round_up(k, lane)
        n_pad = _round_up(n, lane)
        w_p = jnp.zeros((k_pad, n_pad), dtype=jnp.bfloat16)
        w_p = w_p.at[:k, :n].set(w_t.astype(jnp.bfloat16))
        b_p = jnp.zeros((1, n_pad), dtype=jnp.float32)
        b_p = b_p.at[0, :n].set(b.astype(jnp.float32))
        padded.append((w_p, b_p))
    return padded


def _vmem_capacity_bytes():
    try:
        return int(pltpu.get_tpu_info().vmem_capacity_bytes)
    except Exception:
        return 64 << 20  # conservative: v7x per-TensorCore VMEM


def _estimate_vmem_bytes(tm, in_dim, out_pad, padded_params, weight_buffers=2):
    wbytes = sum(
        w.size * w.dtype.itemsize + b.size * b.dtype.itemsize
        for w, b in padded_params
    ) * weight_buffers
    io = 2 * tm * in_dim * 4 + 2 * tm * out_pad * 4     # double-buffered x / out tiles
    max_n = max(w.shape[1] for w, _ in padded_params)
    live = 3 * tm * max_n * 4                           # a few live f32 intermediates
    return wbytes + io + live


def fused_dae_forward(x, padded_params, activations, out_dim,
                      lrelu_slope=0.1, tile_m=512):
    """Run the full layer chain act_i(h @ W_i + b_i) in a single Pallas kernel.

    x:             (M, input_dim) f32
    padded_params: list of (W_t bf16 (Kp, Np), b f32 (1, Np)) per layer (lane-padded)
    activations:   activation names per layer ("none" for the output layer)
    out_dim:       true (un-padded) output feature count
    """
    M, in_dim = x.shape
    out_pad = padded_params[-1][0].shape[1]

    # Batch tile: whole batch for tiny inputs; otherwise aim for >= 2 grid steps
    # so the "parallel" grid axis can be sharded across TensorCores (v7x megacore).
    if M <= 8:
        tm = M                               # full-dim block (allowed)
    else:
        tm = min(tile_m, max(8, _round_up(pl.cdiv(M, 2), 8)))
    grid = (pl.cdiv(M, tm),)                 # ragged tail block writeback is masked

    # Budget scoped VMEM explicitly when the resident set outgrows the defaults.
    est = _estimate_vmem_bytes(tm, in_dim, out_pad, padded_params)
    vmem_limit = None
    if est > (16 << 20):                     # above the v5e default scoped limit
        cap = _vmem_capacity_bytes()
        vmem_limit = min(int(cap * 0.9), max(32 << 20, int(est * 1.5)))

    kernel = functools.partial(
        _fused_dae_kernel,
        activations=tuple(activations),
        lrelu_slope=lrelu_slope,
    )

    def build_and_run(single_buffer_weights):
        flat_inputs = []
        param_specs = []
        for w_p, b_p in padded_params:
            flat_inputs.append(w_p)
            flat_inputs.append(b_p)
            # Constant index_map: weights/biases stay resident across all grid
            # steps; Buffered(1) drops the pointless second pipeline buffer.
            extra = (
                {"pipeline_mode": pl.Buffered(1)} if single_buffer_weights else {}
            )
            param_specs.append(pl.BlockSpec(w_p.shape, lambda i: (0, 0), **extra))
            param_specs.append(pl.BlockSpec(b_p.shape, lambda i: (0, 0), **extra))

        return pl.pallas_call(
            kernel,
            out_shape=jax.ShapeDtypeStruct((M, out_pad), jnp.float32),
            grid=grid,
            in_specs=[pl.BlockSpec((tm, in_dim), lambda i: (i, 0))] + param_specs,
            out_specs=pl.BlockSpec((tm, out_pad), lambda i: (i, 0)),
            compiler_params=pltpu.CompilerParams(
                dimension_semantics=("parallel",),
                vmem_limit_bytes=vmem_limit,
            ),
        )(x, *flat_inputs)

    try:
        out = build_and_run(single_buffer_weights=True)
    except Exception:
        # Installed Pallas without BlockSpec pipeline_mode / Buffered(1) support.
        out = build_and_run(single_buffer_weights=False)

    return out[:, :out_dim] if out_pad != out_dim else out


# ----------------------------------------------------------------------------
# SimpleDAE module (parameters built deterministically in-script)
# ----------------------------------------------------------------------------
class SimpleDAEPallas:
    def __init__(self, input_dim, layer_units, activations, lrelu_slope=0.1, key=None):
        if len(layer_units) != len(activations):
            raise ValueError("length of 'layer_units' must equal to 'activations'")
        self.lrelu_slope = lrelu_slope
        self.out_dim = input_dim

        if key is None:
            key = jax.random.PRNGKey(0)

        # Layer dims: input -> layer_units[0] -> ... -> layer_units[-1] -> input
        dims = [input_dim] + list(layer_units) + [input_dim]
        self.activations = list(activations) + ["none"]  # output_layer has no activation

        self.params = []  # list of (W_transposed (in, out) f32, b (out,) f32)
        for fan_in, fan_out in zip(dims[:-1], dims[1:]):
            key, kw, kb = jax.random.split(key, 3)
            bound = 1.0 / math.sqrt(fan_in)
            # PyTorch nn.Linear default init: U(-1/sqrt(fan_in), 1/sqrt(fan_in))
            w = jax.random.uniform(
                kw, (fan_out, fan_in), minval=-bound, maxval=bound, dtype=jnp.float32
            )
            b = jax.random.uniform(
                kb, (fan_out,), minval=-bound, maxval=bound, dtype=jnp.float32
            )
            self.params.append((jnp.transpose(w), b))

        # Lane-padded bf16 weights / f32 biases used by the kernel.
        self.padded_params = _pad_params(self.params, lane=LANE)

    def __call__(self, x):
        return fused_dae_forward(
            x,
            self.padded_params,
            self.activations,
            self.out_dim,
            lrelu_slope=self.lrelu_slope,
        )


# ----------------------------------------------------------------------------
# Reference (plain JAX, same bf16-weight numerics) for sanity checking
# ----------------------------------------------------------------------------
def reference_forward(model, x):
    h = x.astype(jnp.float32)
    for (w_t, b), act in zip(model.params, model.activations):
        y = jnp.dot(h.astype(jnp.bfloat16), w_t.astype(jnp.bfloat16),
                    preferred_element_type=jnp.float32) + b
        h = _apply_activation(y, act, model.lrelu_slope)
    return h


if __name__ == "__main__":
    key = jax.random.PRNGKey(0)
    k_in, k_model = jax.random.split(key)

    batch = 8
    input_dim = 16
    layer_units = [32, 32, 8]
    activations = ["relu", "tanh", "sigmoid"]

    x = jax.random.normal(k_in, (batch, input_dim), dtype=jnp.float32)

    model = SimpleDAEPallas(
        input_dim, layer_units, activations, lrelu_slope=0.1, key=k_model
    )

    out = model(x)
    out = jax.block_until_ready(out)

    ref = reference_forward(model, x)
    assert out.shape == (batch, input_dim)
    assert jnp.allclose(out, ref, atol=2e-3, rtol=2e-3), "mismatch vs reference"

    print("KERNEL_OK")
</pallas_src>

<mosaic_0001>
module attributes {stable_mosaic.version = 11 : i64} {
  func.func @_fused_dae_kernel(%arg0: i32, %arg1: memref<8x16xf32, #tpu.memory_space<vmem>>, %arg2: memref<16x128xbf16, #tpu.memory_space<vmem>>, %arg3: memref<1x128xf32, #tpu.memory_space<vmem>>, %arg4: memref<128x128xbf16, #tpu.memory_space<vmem>>, %arg5: memref<1x128xf32, #tpu.memory_space<vmem>>, %arg6: memref<128x128xbf16, #tpu.memory_space<vmem>>, %arg7: memref<1x128xf32, #tpu.memory_space<vmem>>, %arg8: memref<128x128xbf16, #tpu.memory_space<vmem>>, %arg9: memref<1x128xf32, #tpu.memory_space<vmem>>, %arg10: memref<8x128xf32, #tpu.memory_space<vmem>>) attributes {dimension_semantics = [#tpu.dimension_semantics<parallel>], iteration_bounds = array<i64: 1>, scalar_prefetch = 0 : i64, scratch_operands = 0 : i64, tpu.core_type = #tpu.core_type<tc>, window_params = [{transform_indices = @transform_0, window_bounds = array<i64: 8, 16>}, {pipeline_mode = #tpu.pipeline_mode<synchronous>, transform_indices = @transform_1, window_bounds = array<i64: 16, 128>}, {pipeline_mode = #tpu.pipeline_mode<synchronous>, transform_indices = @transform_2, window_bounds = array<i64: 1, 128>}, {pipeline_mode = #tpu.pipeline_mode<synchronous>, transform_indices = @transform_3, window_bounds = array<i64: 128, 128>}, {pipeline_mode = #tpu.pipeline_mode<synchronous>, transform_indices = @transform_4, window_bounds = array<i64: 1, 128>}, {pipeline_mode = #tpu.pipeline_mode<synchronous>, transform_indices = @transform_5, window_bounds = array<i64: 128, 128>}, {pipeline_mode = #tpu.pipeline_mode<synchronous>, transform_indices = @transform_6, window_bounds = array<i64: 1, 128>}, {pipeline_mode = #tpu.pipeline_mode<synchronous>, transform_indices = @transform_7, window_bounds = array<i64: 128, 128>}, {pipeline_mode = #tpu.pipeline_mode<synchronous>, transform_indices = @transform_8, window_bounds = array<i64: 1, 128>}, {transform_indices = @transform_9, window_bounds = array<i64: 8, 128>}]} {
    %c0 = arith.constant 0 : index
    %c0_0 = arith.constant 0 : index
    %0 = vector.load %arg1[%c0, %c0_0] : memref<8x16xf32, #tpu.memory_space<vmem>>, vector<8x16xf32>
    %c0_1 = arith.constant 0 : index
    %c0_2 = arith.constant 0 : index
    %1 = vector.load %arg2[%c0_1, %c0_2] : memref<16x128xbf16, #tpu.memory_space<vmem>>, vector<16x128xbf16>
    %c0_3 = arith.constant 0 : index
    %c0_4 = arith.constant 0 : index
    %2 = vector.load %arg3[%c0_3, %c0_4] : memref<1x128xf32, #tpu.memory_space<vmem>>, vector<1x128xf32>
    %3 = arith.truncf %0 : vector<8x16xf32> to vector<8x16xbf16>
    %cst = arith.constant dense<0.000000e+00> : vector<8x128xf32>
    %4 = tpu.matmul %3, %1, %cst {dimension_numbers = #tpu.dot_dimension_numbers<[1], [0], [0], [1], [0, 0, 1, 1], [], []>} : vector<8x16xbf16>, vector<16x128xbf16>, vector<8x128xf32> -> vector<8x128xf32>
    %5 = vector.broadcast %2 : vector<1x128xf32> to vector<8x128xf32>
    %6 = arith.addf %4, %5 : vector<8x128xf32>
    %cst_5 = arith.constant 0.000000e+00 : f32
    %7 = vector.broadcast %cst_5 : f32 to vector<8x128xf32>
    %8 = arith.maximumf %6, %7 : vector<8x128xf32>
    %c0_6 = arith.constant 0 : index
    %c0_7 = arith.constant 0 : index
    %9 = vector.load %arg4[%c0_6, %c0_7] : memref<128x128xbf16, #tpu.memory_space<vmem>>, vector<128x128xbf16>
    %c0_8 = arith.constant 0 : index
    %c0_9 = arith.constant 0 : index
    %10 = vector.load %arg5[%c0_8, %c0_9] : memref<1x128xf32, #tpu.memory_space<vmem>>, vector<1x128xf32>
    %11 = arith.truncf %8 : vector<8x128xf32> to vector<8x128xbf16>
    %cst_10 = arith.constant dense<0.000000e+00> : vector<8x128xf32>
    %12 = tpu.matmul %11, %9, %cst_10 {dimension_numbers = #tpu.dot_dimension_numbers<[1], [0], [0], [1], [0, 0, 1, 1], [], []>} : vector<8x128xbf16>, vector<128x128xbf16>, vector<8x128xf32> -> vector<8x128xf32>
    %13 = vector.broadcast %10 : vector<1x128xf32> to vector<8x128xf32>
    %14 = arith.addf %12, %13 : vector<8x128xf32>
    %15 = math.tanh %14 : vector<8x128xf32>
    %c0_11 = arith.constant 0 : index
    %c0_12 = arith.constant 0 : index
    %16 = vector.load %arg6[%c0_11, %c0_12] : memref<128x128xbf16, #tpu.memory_space<vmem>>, vector<128x128xbf16>
    %c0_13 = arith.constant 0 : index
    %c0_14 = arith.constant 0 : index
    %17 = vector.load %arg7[%c0_13, %c0_14] : memref<1x128xf32, #tpu.memory_space<vmem>>, vector<1x128xf32>
    %18 = arith.truncf %15 : vector<8x128xf32> to vector<8x128xbf16>
    %cst_15 = arith.constant dense<0.000000e+00> : vector<8x128xf32>
    %19 = tpu.matmul %18, %16, %cst_15 {dimension_numbers = #tpu.dot_dimension_numbers<[1], [0], [0], [1], [0, 0, 1, 1], [], []>} : vector<8x128xbf16>, vector<128x128xbf16>, vector<8x128xf32> -> vector<8x128xf32>
    %20 = vector.broadcast %17 : vector<1x128xf32> to vector<8x128xf32>
    %21 = arith.addf %19, %20 : vector<8x128xf32>
    %22 = arith.negf %21 : vector<8x128xf32>
    %23 = math.exp %22 : vector<8x128xf32>
    %cst_16 = arith.constant 1.000000e+00 : f32
    %24 = vector.broadcast %cst_16 : f32 to vector<8x128xf32>
    %25 = arith.addf %24, %23 : vector<8x128xf32>
    %26 = arith.divf %24, %25 : vector<8x128xf32>
    %c0_17 = arith.constant 0 : index
    %c0_18 = arith.constant 0 : index
    %27 = vector.load %arg8[%c0_17, %c0_18] : memref<128x128xbf16, #tpu.memory_space<vmem>>, vector<128x128xbf16>
    %c0_19 = arith.constant 0 : index
    %c0_20 = arith.constant 0 : index
    %28 = vector.load %arg9[%c0_19, %c0_20] : memref<1x128xf32, #tpu.memory_space<vmem>>, vector<1x128xf32>
    %29 = arith.truncf %26 : vector<8x128xf32> to vector<8x128xbf16>
    %cst_21 = arith.constant dense<0.000000e+00> : vector<8x128xf32>
    %30 = tpu.matmul %29, %27, %cst_21 {dimension_numbers = #tpu.dot_dimension_numbers<[1], [0], [0], [1], [0, 0, 1, 1], [], []>} : vector<8x128xbf16>, vector<128x128xbf16>, vector<8x128xf32> -> vector<8x128xf32>
    %31 = vector.broadcast %28 : vector<1x128xf32> to vector<8x128xf32>
    %32 = arith.addf %30, %31 : vector<8x128xf32>
    %c0_22 = arith.constant 0 : index
    %c0_23 = arith.constant 0 : index
    %33 = vector.load %arg10[%c0_22, %c0_23] : memref<8x128xf32, #tpu.memory_space<vmem>>, vector<8x128xf32>
    tpu.vector_store %arg10[%c0_22, %c0_23], %32 {strides = array<i32>} : memref<8x128xf32, #tpu.memory_space<vmem>>, vector<8x128xf32>,
    return
  }
  func.func @transform_0(%arg0: i32) -> (i32, i32) {
    %c0_i32 = arith.constant 0 : i32
    %c0_i32_0 = arith.constant 0 : i32
    return %arg0, %c0_i32 : i32, i32
  }
  func.func @transform_1(%arg0: i32) -> (i32, i32) {
    %c0_i32 = arith.constant 0 : i32
    %c0_i32_0 = arith.constant 0 : i32
    %c0_i32_1 = arith.constant 0 : i32
    return %c0_i32, %c0_i32_0 : i32, i32
  }
  func.func @transform_2(%arg0: i32) -> (i32, i32) {
    %c0_i32 = arith.constant 0 : i32
    %c0_i32_0 = arith.constant 0 : i32
    %c0_i32_1 = arith.constant 0 : i32
    return %c0_i32, %c0_i32_0 : i32, i32
  }
  func.func @transform_3(%arg0: i32) -> (i32, i32) {
    %c0_i32 = arith.constant 0 : i32
    %c0_i32_0 = arith.constant 0 : i32
    %c0_i32_1 = arith.constant 0 : i32
    return %c0_i32, %c0_i32_0 : i32, i32
  }
  func.func @transform_4(%arg0: i32) -> (i32, i32) {
    %c0_i32 = arith.constant 0 : i32
    %c0_i32_0 = arith.constant 0 : i32
    %c0_i32_1 = arith.constant 0 : i32
    return %c0_i32, %c0_i32_0 : i32, i32
  }
  func.func @transform_5(%arg0: i32) -> (i32, i32) {
    %c0_i32 = arith.constant 0 : i32
    %c0_i32_0 = arith.constant 0 : i32
    %c0_i32_1 = arith.constant 0 : i32
    return %c0_i32, %c0_i32_0 : i32, i32
  }
  func.func @transform_6(%arg0: i32) -> (i32, i32) {
    %c0_i32 = arith.constant 0 : i32
    %c0_i32_0 = arith.constant 0 : i32
    %c0_i32_1 = arith.constant 0 : i32
    return %c0_i32, %c0_i32_0 : i32, i32
  }
  func.func @transform_7(%arg0: i32) -> (i32, i32) {
    %c0_i32 = arith.constant 0 : i32
    %c0_i32_0 = arith.constant 0 : i32
    %c0_i32_1 = arith.constant 0 : i32
    return %c0_i32, %c0_i32_0 : i32, i32
  }
  func.func @transform_8(%arg0: i32) -> (i32, i32) {
    %c0_i32 = arith.constant 0 : i32
    %c0_i32_0 = arith.constant 0 : i32
    %c0_i32_1 = arith.constant 0 : i32
    return %c0_i32, %c0_i32_0 : i32, i32
  }
  func.func @transform_9(%arg0: i32) -> (i32, i32) {
    %c0_i32 = arith.constant 0 : i32
    %c0_i32_0 = arith.constant 0 : i32
    return %arg0, %c0_i32 : i32, i32
  }
}

module attributes {stable_mosaic.version = 11 : i64} {
  func.func @_fused_dae_kernel(%arg0: i32, %arg1: memref<8x16xf32, #tpu.memory_space<vmem>>, %arg2: memref<16x128xbf16, #tpu.memory_space<vmem>>, %arg3: memref<1x128xf32, #tpu.memory_space<vmem>>, %arg4: memref<128x128xbf16, #tpu.memory_space<vmem>>, %arg5: memref<1x128xf32, #tpu.memory_space<vmem>>, %arg6: memref<128x128xbf16, #tpu.memory_space<vmem>>, %arg7: memref<1x128xf32, #tpu.memory_space<vmem>>, %arg8: memref<128x128xbf16, #tpu.memory_space<vmem>>, %arg9: memref<1x128xf32, #tpu.memory_space<vmem>>, %arg10: memref<8x128xf32, #tpu.memory_space<vmem>>) attributes {dimension_semantics = [#tpu.dimension_semantics<parallel>], iteration_bounds = array<i64: 1>, scalar_prefetch = 0 : i64, scratch_operands = 0 : i64, tpu.core_type = #tpu.core_type<tc>, window_params = [{transform_indices = @transform_0, window_bounds = array<i64: 8, 16>}, {pipeline_mode = #tpu.pipeline_mode<synchronous>, transform_indices = @transform_1, window_bounds = array<i64: 16, 128>}, {pipeline_mode = #tpu.pipeline_mode<synchronous>, transform_indices = @transform_2, window_bounds = array<i64: 1, 128>}, {pipeline_mode = #tpu.pipeline_mode<synchronous>, transform_indices = @transform_3, window_bounds = array<i64: 128, 128>}, {pipeline_mode = #tpu.pipeline_mode<synchronous>, transform_indices = @transform_4, window_bounds = array<i64: 1, 128>}, {pipeline_mode = #tpu.pipeline_mode<synchronous>, transform_indices = @transform_5, window_bounds = array<i64: 128, 128>}, {pipeline_mode = #tpu.pipeline_mode<synchronous>, transform_indices = @transform_6, window_bounds = array<i64: 1, 128>}, {pipeline_mode = #tpu.pipeline_mode<synchronous>, transform_indices = @transform_7, window_bounds = array<i64: 128, 128>}, {pipeline_mode = #tpu.pipeline_mode<synchronous>, transform_indices = @transform_8, window_bounds = array<i64: 1, 128>}, {transform_indices = @transform_9, window_bounds = array<i64: 8, 128>}]} {
    %c0 = arith.constant 0 : index
    %c0_0 = arith.constant 0 : index
    %0 = vector.load %arg1[%c0, %c0_0] : memref<8x16xf32, #tpu.memory_space<vmem>>, vector<8x16xf32>
    %c0_1 = arith.constant 0 : index
    %c0_2 = arith.constant 0 : index
    %1 = vector.load %arg2[%c0_1, %c0_2] : memref<16x128xbf16, #tpu.memory_space<vmem>>, vector<16x128xbf16>
    %c0_3 = arith.constant 0 : index
    %c0_4 = arith.constant 0 : index
    %2 = vector.load %arg3[%c0_3, %c0_4] : memref<1x128xf32, #tpu.memory_space<vmem>>, vector<1x128xf32>
    %3 = arith.truncf %0 : vector<8x16xf32> to vector<8x16xbf16>
    %cst = arith.constant dense<0.000000e+00> : vector<8x128xf32>
    %4 = tpu.matmul %3, %1, %cst {dimension_numbers = #tpu.dot_dimension_numbers<[1], [0], [0], [1], [0, 0, 1, 1], [], []>} : vector<8x16xbf16>, vector<16x128xbf16>, vector<8x128xf32> -> vector<8x128xf32>
    %5 = vector.broadcast %2 : vector<1x128xf32> to vector<8x128xf32>
    %6 = arith.addf %4, %5 : vector<8x128xf32>
    %cst_5 = arith.constant 0.000000e+00 : f32
    %7 = vector.broadcast %cst_5 : f32 to vector<8x128xf32>
    %8 = arith.maximumf %6, %7 : vector<8x128xf32>
    %c0_6 = arith.constant 0 : index
    %c0_7 = arith.constant 0 : index
    %9 = vector.load %arg4[%c0_6, %c0_7] : memref<128x128xbf16, #tpu.memory_space<vmem>>, vector<128x128xbf16>
    %c0_8 = arith.constant 0 : index
    %c0_9 = arith.constant 0 : index
    %10 = vector.load %arg5[%c0_8, %c0_9] : memref<1x128xf32, #tpu.memory_space<vmem>>, vector<1x128xf32>
    %11 = arith.truncf %8 : vector<8x128xf32> to vector<8x128xbf16>
    %cst_10 = arith.constant dense<0.000000e+00> : vector<8x128xf32>
    %12 = tpu.matmul %11, %9, %cst_10 {dimension_numbers = #tpu.dot_dimension_numbers<[1], [0], [0], [1], [0, 0, 1, 1], [], []>} : vector<8x128xbf16>, vector<128x128xbf16>, vector<8x128xf32> -> vector<8x128xf32>
    %13 = vector.broadcast %10 : vector<1x128xf32> to vector<8x128xf32>
    %14 = arith.addf %12, %13 : vector<8x128xf32>
    %15 = math.tanh %14 : vector<8x128xf32>
    %c0_11 = arith.constant 0 : index
    %c0_12 = arith.constant 0 : index
    %16 = vector.load %arg6[%c0_11, %c0_12] : memref<128x128xbf16, #tpu.memory_space<vmem>>, vector<128x128xbf16>
    %c0_13 = arith.constant 0 : index
    %c0_14 = arith.constant 0 : index
    %17 = vector.load %arg7[%c0_13, %c0_14] : memref<1x128xf32, #tpu.memory_space<vmem>>, vector<1x128xf32>
    %18 = arith.truncf %15 : vector<8x128xf32> to vector<8x128xbf16>
    %cst_15 = arith.constant dense<0.000000e+00> : vector<8x128xf32>
    %19 = tpu.matmul %18, %16, %cst_15 {dimension_numbers = #tpu.dot_dimension_numbers<[1], [0], [0], [1], [0, 0, 1, 1], [], []>} : vector<8x128xbf16>, vector<128x128xbf16>, vector<8x128xf32> -> vector<8x128xf32>
    %20 = vector.broadcast %17 : vector<1x128xf32> to vector<8x128xf32>
    %21 = arith.addf %19, %20 : vector<8x128xf32>
    %22 = arith.negf %21 : vector<8x128xf32>
    %23 = math.exp %22 : vector<8x128xf32>
    %cst_16 = arith.constant 1.000000e+00 : f32
    %24 = vector.broadcast %cst_16 : f32 to vector<8x128xf32>
    %25 = arith.addf %24, %23 : vector<8x128xf32>
    %26 = arith.divf %24, %25 : vector<8x128xf32>
    %c0_17 = arith.constant 0 : index
    %c0_18 = arith.constant 0 : index
    %27 = vector.load %arg8[%c0_17, %c0_18] : memref<128x128xbf16, #tpu.memory_space<vmem>>, vector<128x128xbf16>
    %c0_19 = arith.constant 0 : index
    %c0_20 = arith.constant 0 : index
    %28 = vector.load %arg9[%c0_19, %c0_20] : memref<1x128xf32, #tpu.memory_space<vmem>>, vector<1x128xf32>
    %29 = arith.truncf %26 : vector<8x128xf32> to vector<8x128xbf16>
    %cst_21 = arith.constant dense<0.000000e+00> : vector<8x128xf32>
    %30 = tpu.matmul %29, %27, %cst_21 {dimension_numbers = #tpu.dot_dimension_numbers<[1], [0], [0], [1], [0, 0, 1, 1], [], []>} : vector<8x128xbf16>, vector<128x128xbf16>, vector<8x128xf32> -> vector<8x128xf32>
    %31 = vector.broadcast %28 : vector<1x128xf32> to vector<8x128xf32>
    %32 = arith.addf %30, %31 : vector<8x128xf32>
    %c0_22 = arith.constant 0 : index
    %c0_23 = arith.constant 0 : index
    %33 = vector.load %arg10[%c0_22, %c0_23] : memref<8x128xf32, #tpu.memory_space<vmem>>, vector<8x128xf32>
    tpu.vector_store %arg10[%c0_22, %c0_23], %32 {strides = array<i32>} : memref<8x128xf32, #tpu.memory_space<vmem>>, vector<8x128xf32>,
    return
  }
  func.func @transform_0(%arg0: i32) -> (i32, i32) {
    %c0_i32 = arith.constant 0 : i32
    %c0_i32_0 = arith.constant 0 : i32
    return %arg0, %c0_i32 : i32, i32
  }
  func.func @transform_1(%arg0: i32) -> (i32, i32) {
    %c0_i32 = arith.constant 0 : i32
    %c0_i32_0 = arith.constant 0 : i32
    %c0_i32_1 = arith.constant 0 : i32
    return %c0_i32, %c0_i32_0 : i32, i32
  }
  func.func @transform_2(%arg0: i32) -> (i32, i32) {
    %c0_i32 = arith.constant 0 : i32
    %c0_i32_0 = arith.constant 0 : i32
    %c0_i32_1 = arith.constant 0 : i32
    return %c0_i32, %c0_i32_0 : i32, i32
  }
  func.func @transform_3(%arg0: i32) -> (i32, i32) {
    %c0_i32 = arith.constant 0 : i32
    %c0_i32_0 = arith.constant 0 : i32
    %c0_i32_1 = arith.constant 0 : i32
    return %c0_i32, %c0_i32_0 : i32, i32
  }
  func.func @transform_4(%arg0: i32) -> (i32, i32) {
    %c0_i32 = arith.constant 0 : i32
    %c0_i32_0 = arith.constant 0 : i32
    %c0_i32_1 = arith.constant 0 : i32
    return %c0_i32, %c0_i32_0 : i32, i32
  }
  func.func @transform_5(%arg0: i32) -> (i32, i32) {
    %c0_i32 = arith.constant 0 : i32
    %c0_i32_0 = arith.constant 0 : i32
    %c0_i32_1 = arith.constant 0 : i32
    return %c0_i32, %c0_i32_0 : i32, i32
  }
  func.func @transform_6(%arg0: i32) -> (i32, i32) {
    %c0_i32 = arith.constant 0 : i32
    %c0_i32_0 = arith.constant 0 : i32
    %c0_i32_1 = arith.constant 0 : i32
    return %c0_i32, %c0_i32_0 : i32, i32
  }
  func.func @transform_7(%arg0: i32) -> (i32, i32) {
    %c0_i32 = arith.constant 0 : i32
    %c0_i32_0 = arith.constant 0 : i32
    %c0_i32_1 = arith.constant 0 : i32
    return %c0_i32, %c0_i32_0 : i32, i32
  }
  func.func @transform_8(%arg0: i32) -> (i32, i32) {
    %c0_i32 = arith.constant 0 : i32
    %c0_i32_0 = arith.constant 0 : i32
    %c0_i32_1 = arith.constant 0 : i32
    return %c0_i32, %c0_i32_0 : i32, i32
  }
  func.func @transform_9(%arg0: i32) -> (i32, i32) {
    %c0_i32 = arith.constant 0 : i32
    %c0_i32_0 = arith.constant 0 : i32
    return %arg0, %c0_i32 : i32, i32
  }
}

</mosaic_0001>

<bundles_post_ra>
// kernel: tpu_custom_call.1
= control target key start
LH: loop header
LB: loop body
LE: loop exit
PB: predicated region body
PF: predicated region fallthrough
CT: control target
= control target key end

     0   :  { %14 = vsyncpa [#allocation3], 0  ;;  %s813_s0 = inlined_call_operand.hbm [shape: f32[8,16], index: 0, kind: input, shape index: {}]   ;;  %s814_s1 = inlined_call_operand.hbm [shape: bf16[16,128], index: 1, kind: input, shape index: {}]   ;;  %s815_s2 = inlined_call_operand.vmem [shape: f32[1,128], index: 2, kind: input, shape index: {}]   ;;  %s816_s3 = inlined_call_operand.hbm [shape: bf16[128,128], index: 3, kind: input, shape index: {}]   ;;  %s817_s4 = inlined_call_operand.vmem [shape: f32[1,128], index: 4, kind: input, shape index: {}]   ;;  %s818_s5 = inlined_call_operand.hbm [shape: bf16[128,128], index: 5, kind: input, shape index: {}]   ;;  %s819_s6 = inlined_call_operand.vmem [shape: f32[1,128], index: 6, kind: input, shape index: {}]   ;;  %s820_s7 = inlined_call_operand.hbm [shape: bf16[128,128], index: 7, kind: input, shape index: {}]   ;;  %s821_s8 = inlined_call_operand.vmem [shape: f32[1,128], index: 8, kind: input, shape index: {}]   ;;  %s822_s9 = inlined_call_operand.hbm [shape: f32[8,128], index: 9, kind: output, shape index: {}]  }
   0x1   :  { %15 = vsyncpa [#allocation6], 0 }
   0x2   :  { %16 = vsyncpa [#allocation9], 0  ;;  %s33_s11 = sshll.u32 %s814_s1, 4  ;;  %s34_s11 = int_to_ptr.hbm [resolvable:$true] %s33_s11 }
   0x3   :  { %17 = vsyncpa [#allocation4], 0  ;;  %s725_s12 = smov [#allocation5]   ;;  %s63_s16 = sshll.u32 %s818_s5, 4  ;;  %s64_s16 = int_to_ptr.hbm [resolvable:$true] %s63_s16 }
   0x4   :  { %s35_s13 = sshll.u32 %s725_s12, 4  ;;  %s726_s17 = smov 64   ;;  %s36_s13 = int_to_ptr.vmem [resolvable:$true] %s35_s13 }
   0x5   :  { %s727_s18 = smov 4   ;;  %s728_s19 = smov [#allocation8]  }
   0x6   :  { %41 = dma.hbm_to_vmem [thread:$0]  %s34_s11, 128, %s36_s13, [#allocation6], %s726_s17, %s726_s17, %s727_s18  }
   0x7   :  { %s65_s20 = sshll.u32 %s728_s19, 4  ;;  %s23_s23 = sshll.u32 %s813_s0, 4  ;;  %s66_s20 = int_to_ptr.vmem [resolvable:$true] %s65_s20  ;;  %s24_s23 = int_to_ptr.hbm [resolvable:$true] %s23_s23 }
   0x8   :  { %71 = dma.hbm_to_vmem [thread:$0]  %s64_s16, 1024, %s66_s20, [#allocation9], %s726_s17, %s726_s17, %s727_s18  }
   0x9   :  { %s48_s25 = sshll.u32 %s816_s3, 4  ;;  %s729_s26 = smov [#allocation2]   ;;  %s49_s25 = int_to_ptr.hbm [resolvable:$true] %s48_s25 }
   0xa   :  { %s25_s27 = sshll.u32 %s729_s26, 4  ;;  %s730_s5 = smov [#allocation7]   ;;  %s26_s27 = int_to_ptr.vmem [resolvable:$true] %s25_s27 }
   0xb   :  { %28 = dma.hbm_to_vmem [thread:$0]  %s24_s23, 128, %s26_s27, [#allocation3]  }
   0xc   :  { %s50_s28 = sshll.u32 %s730_s5, 4  ;;  %s78_s10 = sshll.u32 %s820_s7, 4  ;;  %s51_s28 = int_to_ptr.vmem [resolvable:$true] %s50_s28  ;;  %s79_s10 = int_to_ptr.hbm [resolvable:$true] %s78_s10 }
   0xd   :  { %56 = dma.hbm_to_vmem [thread:$0]  %s49_s25, 1024, %s51_s28, [#allocation6], %s726_s17, %s726_s17, %s727_s18  }
   0xe   :  { %s731_s0 = smov [#allocation10]  }
   0xf   :  { %s80_s11 = sshll.u32 %s731_s0, 4  ;;  %s81_s11 = int_to_ptr.vmem [resolvable:$true] %s80_s11 }
  0x10   :  { %86 = dma.hbm_to_vmem [thread:$0]  %s79_s10, 1024, %s81_s11, [#allocation9], %s726_s17, %s726_s17, %s727_s18  }
  0x11   :  { %717 = dma.done.wait [#allocation3], 128  }
  0x12   :  { %718 = vsyncadd [#allocation3], 4294967168 }
  0x13   :  { %719 = dma.done.wait [#allocation6], 1152  }
  0x14   :  { %720 = vsyncadd [#allocation6], 4294966144 }
  0x15   :  { %721 = dma.done.wait [#allocation9], 2048  }
  0x16   :  { %722 = vsyncadd [#allocation9], 4294965248  ;;  %v530_v0 = vld [vmem:[#allocation5] sm:$0xff]  ;;  %v110_v1 = vld [vmem:[#allocation2] sm:$0xff]  ;;  %vm124_vm0 = vcmask 130048   ;;  %s732_s15 = smov [#allocation11]  }
  0x17   :  { %v538_v2 = vld [vmem:[#allocation7 + $0x38] sm:$0xff]  ;;  %v114_v3 = vpack.c.bf16 %v110_v1, %v110_v1  ;;  %135 = vmatpush.bf16.msra.mxu0 %v530_v0  ;;  %v537_v4 = vld [vmem:[#allocation7 + $0x30] sm:$0xff]  ;;  %v536_v5 = vld [vmem:[#allocation7 + $0x28] sm:$0xff]  ;;  %s414_s16 = sshll.u32 %s732_s15, 4  ;;  %s416_s19 = sshll.u32 %s822_s9, 4  ;;  %s415_s16 = int_to_ptr.vmem [resolvable:$true] %s414_s16  ;;  %s417_s19 = int_to_ptr.hbm [resolvable:$true] %s416_s19 }
  0x18   :  { %211 = vmatpush.bf16.msra.mxu1 %v538_v2  ;;  %v535_v6 = vld [vmem:[#allocation7 + $0x20] sm:$0xff]  ;;  %v534_v7 = vld [vmem:[#allocation7 + $0x18] sm:$0xff]  ;;  %v533_v8 = vld [vmem:[#allocation7 + $0x10] sm:$0xff] }
  0x19   :  { %v532_v9 = vld [vmem:[#allocation7 + $0x8] sm:$0xff]  ;;  %v531_v10 = vld [vmem:[#allocation7] sm:$0xff]  ;;  %v546_v11 = vld [vmem:[#allocation8 + $0x38] sm:$0xff] }
  0x1a   :  { %432 = vmatmul.msk.bf16.vlgmr.msra.gmra.mxu0 %vm124_vm0, %v114_v3  ;;  %294 = vmatpush.bf16.msra.mxu2 %v546_v11  ;;  %v545_v12 = vld [vmem:[#allocation8 + $0x30] sm:$0xff]  ;;  %v544_v13 = vld [vmem:[#allocation8 + $0x28] sm:$0xff]  ;;  %v543_v14 = vld [vmem:[#allocation8 + $0x20] sm:$0xff] }
  0x1b   :  { %v542_v15 = vld [vmem:[#allocation8 + $0x18] sm:$0xff]  ;;  %v563_v16 = vld [vmem:[%s815_s2] ss:$0 sm:$0xff]  ;;  %v540_v23 = vld [vmem:[#allocation8 + $0x8] sm:$0xff] }
  0x1c   :  { %212 = vmatpush.bf16.msra.mxu1 %v537_v4  ;;  %v541_v22 = vld [vmem:[#allocation8 + $0x10] sm:$0xff]  ;;  %v539_v24 = vld [vmem:[#allocation8] sm:$0xff]  ;;  %v554_v31 = vld [vmem:[#allocation10 + $0x38] sm:$0xff] }
  0x1d   :  { %v564_v25 = vld [vmem:[%s817_s4] ss:$0 sm:$0xff]  ;;  %395 = vmatpush.bf16.msra.mxu3 %v554_v31  ;;  %v552_v33 = vld [vmem:[#allocation10 + $0x28] sm:$0xff]  ;;  %v551_v34 = vld [vmem:[#allocation10 + $0x20] sm:$0xff] }
  0x1e   :  { %295 = vmatpush.bf16.msra.mxu2 %v545_v12  ;;  %v553_v32 = vld [vmem:[#allocation10 + $0x30] sm:$0xff]  ;;  %v550_v35 = vld [vmem:[#allocation10 + $0x18] sm:$0xff]  ;;  %v548_v37 = vld [vmem:[#allocation10 + $0x8] sm:$0xff] }
  0x1f   :  { %v549_v36 = vld [vmem:[#allocation10 + $0x10] sm:$0xff]  ;;  %v547_v38 = vld [vmem:[#allocation10] sm:$0xff] }
  0x20   :  { %213 = vmatpush.bf16.msra.mxu1 %v536_v5  ;;  %v565_v39 = vld [vmem:[%s819_s6] ss:$0 sm:$0xff] }
  0x21   :  { %396 = vmatpush.bf16.msra.mxu3 %v553_v32  ;;  %v566_v57 = vld [vmem:[%s821_s8] ss:$0 sm:$0xff] }
  0x22   :  { %296 = vmatpush.bf16.msra.mxu2 %v544_v13 }
  0x24   :  { %214 = vmatpush.bf16.msra.mxu1 %v535_v6 }
  0x25   :  { %397 = vmatpush.bf16.msra.mxu3 %v552_v33 }
  0x26   :  { %297 = vmatpush.bf16.msra.mxu2 %v543_v14 }
  0x28   :  { %215 = vmatpush.bf16.msra.mxu1 %v534_v7 }
  0x29   :  { %398 = vmatpush.bf16.msra.mxu3 %v551_v34 }
  0x2a   :  { %298 = vmatpush.bf16.msra.mxu2 %v542_v15 }
  0x2c   :  { %216 = vmatpush.bf16.msra.mxu1 %v533_v8 }
  0x2d   :  { %399 = vmatpush.bf16.msra.mxu3 %v550_v35 }
  0x2e   :  { %299 = vmatpush.bf16.msra.mxu2 %v541_v22 }
  0x30   :  { %217 = vmatpush.bf16.msra.mxu1 %v532_v9 }
  0x31   :  { %400 = vmatpush.bf16.msra.mxu3 %v549_v36 }
  0x32   :  { %300 = vmatpush.bf16.msra.mxu2 %v540_v23 }
  0x34   :  { %218 = vmatpush.bf16.msra.mxu1 %v531_v10 }
  0x35   :  { %401 = vmatpush.bf16.msra.mxu3 %v548_v37 }
  0x36   :  { %301 = vmatpush.bf16.msra.mxu2 %v539_v24 }
  0x39   :  { %402 = vmatpush.bf16.msra.mxu3 %v547_v38 }
  0x97   :  { %v137_v17 = vpop.f32.mrf.mxu0 }
  0x98   :  { %v138_v18 = vadd.f32 %v563_v16, %v137_v17 }
  0x9a   :  { %v141_v19 = vmax.f32 %v138_v18, 0.0 }
  0x9c   :  { %v159_v20 = vpack.c.bf16 %v141_v19, %v141_v19 }
  0x9e   :  { %219 = vmatmul.bf16.vlgmr.msra.gmra.mxu1 %v159_v20 }
  0x9f   :  { %v139_v21 = vpop.f32.mrf.mxu0 }
 0x11b   :  { %v220_v26 = vpop.f32.mrf.mxu1 }
 0x11c   :  { %v221_v27 = vadd.f32 %v564_v25, %v220_v26 }
 0x11e   :  { %567 = vtanh.f32 %v221_v27 }
 0x123   :  { %v222_v28 = vpop.f32.mrf.mxu1 }
 0x124   :  { %v568_v29 = vpop.eup %567 }
 0x125   :  { %v242_v30 = vpack.c.bf16 %v568_v29, %v568_v29 }
 0x127   :  { %302 = vmatmul.bf16.vlgmr.msra.gmra.mxu2 %v242_v30 }
 0x1aa   :  { %v303_v40 = vpop.f32.mrf.mxu2 }
 0x1ab   :  { %v304_v41 = vadd.f32 %v565_v39, %v303_v40 }
 0x1ad   :  { %v497_v42 = vmul.f32 -1.442695, %v304_v41 }
 0x1af   :  { %569 = vpow2.f32 %v497_v42 }
 0x1b2   :  { %v305_v43 = vpop.f32.mrf.mxu2 }
 0x1b5   :  { %v570_v44 = vpop.eup %569 }
 0x1b6   :  { %v310_v45 = vadd.f32 1.0, %v570_v44 }
 0x1b8   :  { %571 = vrcp.f32 %v310_v45  ;;  %v322_v49 = vand.u32 2147483648, %v310_v45  ;;  %v320_v51 = vand.u32 2147483647, %v310_v45  ;;  %vm316_vm2 = vweird.f32 %v310_v45 }
 0x1ba   :  { %v323_v53 = vor.u32 1.1754944e-38, %v322_v49  ;;  %vm321_vm4 = vcmp.eq.f32.partialorder %v320_v51, 8.507059e+37 }
 0x1be   :  { %v572_v46 = vpop.eup %571 }
 0x1bf   :  { %v312_v47 = vmul.f32 %v572_v46, %v310_v45  ;;  %vm317_vm1 = vweird.f32 %v572_v46 }
 0x1c0   :  { %vm318_vm3 = vmor %vm316_vm2, %vm317_vm1 }
 0x1c1   :  { %v313_v48 = vsub.f32 1.0, %v312_v47 }
 0x1c3   :  { %v314_v50 = vmul.f32 %v572_v46, %v313_v48 }
 0x1c5   :  { %v315_v52 = vadd.f32 %v572_v46, %v314_v50 }
 0x1c7   :  { %v319_v54 = vsel %vm318_vm3, %v572_v46, %v315_v52 }
 0x1c8   :  { %v324_v55 = vsel %vm321_vm4, %v323_v53, %v319_v54 }
 0x1c9   :  { %v343_v56 = vpack.c.bf16 %v324_v55, %v324_v55 }
 0x1cb   :  { %403 = vmatmul.bf16.vlgmr.msra.gmra.mxu3 %v343_v56 }
 0x24e   :  { %v404_v58 = vpop.f32.mrf.mxu3 }
 0x24f   :  { %v405_v59 = vadd.f32 %v566_v57, %v404_v58 }
 0x251   :  { %408 = vst [vmem:[#allocation11] sm:$0xff] %v405_v59 }
 0x252   :  { %419 = dma.vmem_to_hbm [thread:$0]  %s415_s16, 128, %s417_s19, [#allocation4]  }
 0x256   :  { %v406_v60 = vpop.f32.mrf.mxu3 }
 0x257   :  { %723 = dma.done.wait [#allocation4], 128  }
 0x258   :  { %724 = vsyncadd [#allocation4], 4294967168 }
 0x259   :  { %424 = vsyncpa [#allocation3], 1 }
 0x25a   :  { %425 = vsyncpa [#allocation6], 1 }
 0x25b   :  { %426 = vsyncpa [#allocation9], 1 }
 0x25c   :  { %427 = vsyncpa [#allocation4], 1 }

// kernel: tpu_custom_call.1
= control target key start
LH: loop header
LB: loop body
LE: loop exit
PB: predicated region body
PF: predicated region fallthrough
CT: control target
= control target key end

     0   :  { %14 = vsyncpa [#allocation3], 0  ;;  %s813_s0 = inlined_call_operand.hbm [shape: f32[8,16], index: 0, kind: input, shape index: {}]   ;;  %s814_s1 = inlined_call_operand.hbm [shape: bf16[16,128], index: 1, kind: input, shape index: {}]   ;;  %s815_s2 = inlined_call_operand.vmem [shape: f32[1,128], index: 2, kind: input, shape index: {}]   ;;  %s816_s3 = inlined_call_operand.hbm [shape: bf16[128,128], index: 3, kind: input, shape index: {}]   ;;  %s817_s4 = inlined_call_operand.vmem [shape: f32[1,128], index: 4, kind: input, shape index: {}]   ;;  %s818_s5 = inlined_call_operand.hbm [shape: bf16[128,128], index: 5, kind: input, shape index: {}]   ;;  %s819_s6 = inlined_call_operand.vmem [shape: f32[1,128], index: 6, kind: input, shape index: {}]   ;;  %s820_s7 = inlined_call_operand.hbm [shape: bf16[128,128], index: 7, kind: input, shape index: {}]   ;;  %s821_s8 = inlined_call_operand.vmem [shape: f32[1,128], index: 8, kind: input, shape index: {}]   ;;  %s822_s9 = inlined_call_operand.hbm [shape: f32[8,128], index: 9, kind: output, shape index: {}]  }
   0x1   :  { %15 = vsyncpa [#allocation6], 0 }
   0x2   :  { %16 = vsyncpa [#allocation9], 0  ;;  %s33_s11 = sshll.u32 %s814_s1, 4  ;;  %s34_s11 = int_to_ptr.hbm [resolvable:$true] %s33_s11 }
   0x3   :  { %17 = vsyncpa [#allocation4], 0  ;;  %s725_s12 = smov [#allocation5]   ;;  %s63_s16 = sshll.u32 %s818_s5, 4  ;;  %s64_s16 = int_to_ptr.hbm [resolvable:$true] %s63_s16 }
   0x4   :  { %s35_s13 = sshll.u32 %s725_s12, 4  ;;  %s726_s17 = smov 64   ;;  %s36_s13 = int_to_ptr.vmem [resolvable:$true] %s35_s13 }
   0x5   :  { %s727_s18 = smov 4   ;;  %s728_s19 = smov [#allocation8]  }
   0x6   :  { %41 = dma.hbm_to_vmem [thread:$0]  %s34_s11, 128, %s36_s13, [#allocation6], %s726_s17, %s726_s17, %s727_s18  }
   0x7   :  { %s65_s20 = sshll.u32 %s728_s19, 4  ;;  %s23_s23 = sshll.u32 %s813_s0, 4  ;;  %s66_s20 = int_to_ptr.vmem [resolvable:$true] %s65_s20  ;;  %s24_s23 = int_to_ptr.hbm [resolvable:$true] %s23_s23 }
   0x8   :  { %71 = dma.hbm_to_vmem [thread:$0]  %s64_s16, 1024, %s66_s20, [#allocation9], %s726_s17, %s726_s17, %s727_s18  }
   0x9   :  { %s48_s25 = sshll.u32 %s816_s3, 4  ;;  %s729_s26 = smov [#allocation2]   ;;  %s49_s25 = int_to_ptr.hbm [resolvable:$true] %s48_s25 }
   0xa   :  { %s25_s27 = sshll.u32 %s729_s26, 4  ;;  %s730_s5 = smov [#allocation7]   ;;  %s26_s27 = int_to_ptr.vmem [resolvable:$true] %s25_s27 }
   0xb   :  { %28 = dma.hbm_to_vmem [thread:$0]  %s24_s23, 128, %s26_s27, [#allocation3]  }
   0xc   :  { %s50_s28 = sshll.u32 %s730_s5, 4  ;;  %s78_s10 = sshll.u32 %s820_s7, 4  ;;  %s51_s28 = int_to_ptr.vmem [resolvable:$true] %s50_s28  ;;  %s79_s10 = int_to_ptr.hbm [resolvable:$true] %s78_s10 }
   0xd   :  { %56 = dma.hbm_to_vmem [thread:$0]  %s49_s25, 1024, %s51_s28, [#allocation6], %s726_s17, %s726_s17, %s727_s18  }
   0xe   :  { %s731_s0 = smov [#allocation10]  }
   0xf   :  { %s80_s11 = sshll.u32 %s731_s0, 4  ;;  %s81_s11 = int_to_ptr.vmem [resolvable:$true] %s80_s11 }
  0x10   :  { %86 = dma.hbm_to_vmem [thread:$0]  %s79_s10, 1024, %s81_s11, [#allocation9], %s726_s17, %s726_s17, %s727_s18  }
  0x11   :  { %717 = dma.done.wait [#allocation3], 128  }
  0x12   :  { %718 = vsyncadd [#allocation3], 4294967168 }
  0x13   :  { %719 = dma.done.wait [#allocation6], 1152  }
  0x14   :  { %720 = vsyncadd [#allocation6], 4294966144 }
  0x15   :  { %721 = dma.done.wait [#allocation9], 2048  }
  0x16   :  { %722 = vsyncadd [#allocation9], 4294965248  ;;  %v530_v0 = vld [vmem:[#allocation5] sm:$0xff]  ;;  %v110_v1 = vld [vmem:[#allocation2] sm:$0xff]  ;;  %vm124_vm0 = vcmask 130048   ;;  %s732_s15 = smov [#allocation11]  }
  0x17   :  { %v538_v2 = vld [vmem:[#allocation7 + $0x38] sm:$0xff]  ;;  %v114_v3 = vpack.c.bf16 %v110_v1, %v110_v1  ;;  %135 = vmatpush.bf16.msra.mxu0 %v530_v0  ;;  %v537_v4 = vld [vmem:[#allocation7 + $0x30] sm:$0xff]  ;;  %v536_v5 = vld [vmem:[#allocation7 + $0x28] sm:$0xff]  ;;  %s414_s16 = sshll.u32 %s732_s15, 4  ;;  %s416_s19 = sshll.u32 %s822_s9, 4  ;;  %s415_s16 = int_to_ptr.vmem [resolvable:$true] %s414_s16  ;;  %s417_s19 = int_to_ptr.hbm [resolvable:$true] %s416_s19 }
  0x18   :  { %211 = vmatpush.bf16.msra.mxu1 %v538_v2  ;;  %v535_v6 = vld [vmem:[#allocation7 + $0x20] sm:$0xff]  ;;  %v534_v7 = vld [vmem:[#allocation7 + $0x18] sm:$0xff]  ;;  %v533_v8 = vld [vmem:[#allocation7 + $0x10] sm:$0xff] }
  0x19   :  { %v532_v9 = vld [vmem:[#allocation7 + $0x8] sm:$0xff]  ;;  %v531_v10 = vld [vmem:[#allocation7] sm:$0xff]  ;;  %v546_v11 = vld [vmem:[#allocation8 + $0x38] sm:$0xff] }
  0x1a   :  { %432 = vmatmul.msk.bf16.vlgmr.msra.gmra.mxu0 %vm124_vm0, %v114_v3  ;;  %294 = vmatpush.bf16.msra.mxu2 %v546_v11  ;;  %v545_v12 = vld [vmem:[#allocation8 + $0x30] sm:$0xff]  ;;  %v544_v13 = vld [vmem:[#allocation8 + $0x28] sm:$0xff]  ;;  %v543_v14 = vld [vmem:[#allocation8 + $0x20] sm:$0xff] }
  0x1b   :  { %v542_v15 = vld [vmem:[#allocation8 + $0x18] sm:$0xff]  ;;  %v563_v16 = vld [vmem:[%s815_s2] ss:$0 sm:$0xff]  ;;  %v540_v23 = vld [vmem:[#allocation8 + $0x8] sm:$0xff] }
  0x1c   :  { %212 = vmatpush.bf16.msra.mxu1 %v537_v4  ;;  %v541_v22 = vld [vmem:[#allocation8 + $0x10] sm:$0xff]  ;;  %v539_v24 = vld [vmem:[#allocation8] sm:$0xff]  ;;  %v554_v31 = vld [vmem:[#allocation10 + $0x38] sm:$0xff] }
  0x1d   :  { %v564_v25 = vld [vmem:[%s817_s4] ss:$0 sm:$0xff]  ;;  %395 = vmatpush.bf16.msra.mxu3 %v554_v31  ;;  %v552_v33 = vld [vmem:[#allocation10 + $0x28] sm:$0xff]  ;;  %v551_v34 = vld [vmem:[#allocation10 + $0x20] sm:$0xff] }
  0x1e   :  { %295 = vmatpush.bf16.msra.mxu2 %v545_v12  ;;  %v553_v32 = vld [vmem:[#allocation10 + $0x30] sm:$0xff]  ;;  %v550_v35 = vld [vmem:[#allocation10 + $0x18] sm:$0xff]  ;;  %v548_v37 = vld [vmem:[#allocation10 + $0x8] sm:$0xff] }
  0x1f   :  { %v549_v36 = vld [vmem:[#allocation10 + $0x10] sm:$0xff]  ;;  %v547_v38 = vld [vmem:[#allocation10] sm:$0xff] }
  0x20   :  { %213 = vmatpush.bf16.msra.mxu1 %v536_v5  ;;  %v565_v39 = vld [vmem:[%s819_s6] ss:$0 sm:$0xff] }
  0x21   :  { %396 = vmatpush.bf16.msra.mxu3 %v553_v32  ;;  %v566_v57 = vld [vmem:[%s821_s8] ss:$0 sm:$0xff] }
  0x22   :  { %296 = vmatpush.bf16.msra.mxu2 %v544_v13 }
  0x24   :  { %214 = vmatpush.bf16.msra.mxu1 %v535_v6 }
  0x25   :  { %397 = vmatpush.bf16.msra.mxu3 %v552_v33 }
  0x26   :  { %297 = vmatpush.bf16.msra.mxu2 %v543_v14 }
  0x28   :  { %215 = vmatpush.bf16.msra.mxu1 %v534_v7 }
  0x29   :  { %398 = vmatpush.bf16.msra.mxu3 %v551_v34 }
  0x2a   :  { %298 = vmatpush.bf16.msra.mxu2 %v542_v15 }
  0x2c   :  { %216 = vmatpush.bf16.msra.mxu1 %v533_v8 }
  0x2d   :  { %399 = vmatpush.bf16.msra.mxu3 %v550_v35 }
  0x2e   :  { %299 = vmatpush.bf16.msra.mxu2 %v541_v22 }
  0x30   :  { %217 = vmatpush.bf16.msra.mxu1 %v532_v9 }
  0x31   :  { %400 = vmatpush.bf16.msra.mxu3 %v549_v36 }
  0x32   :  { %300 = vmatpush.bf16.msra.mxu2 %v540_v23 }
  0x34   :  { %218 = vmatpush.bf16.msra.mxu1 %v531_v10 }
  0x35   :  { %401 = vmatpush.bf16.msra.mxu3 %v548_v37 }
  0x36   :  { %301 = vmatpush.bf16.msra.mxu2 %v539_v24 }
  0x39   :  { %402 = vmatpush.bf16.msra.mxu3 %v547_v38 }
  0x97   :  { %v137_v17 = vpop.f32.mrf.mxu0 }
  0x98   :  { %v138_v18 = vadd.f32 %v563_v16, %v137_v17 }
  0x9a   :  { %v141_v19 = vmax.f32 %v138_v18, 0.0 }
  0x9c   :  { %v159_v20 = vpack.c.bf16 %v141_v19, %v141_v19 }
  0x9e   :  { %219 = vmatmul.bf16.vlgmr.msra.gmra.mxu1 %v159_v20 }
  0x9f   :  { %v139_v21 = vpop.f32.mrf.mxu0 }
 0x11b   :  { %v220_v26 = vpop.f32.mrf.mxu1 }
 0x11c   :  { %v221_v27 = vadd.f32 %v564_v25, %v220_v26 }
 0x11e   :  { %567 = vtanh.f32 %v221_v27 }
 0x123   :  { %v222_v28 = vpop.f32.mrf.mxu1 }
 0x124   :  { %v568_v29 = vpop.eup %567 }
 0x125   :  { %v242_v30 = vpack.c.bf16 %v568_v29, %v568_v29 }
 0x127   :  { %302 = vmatmul.bf16.vlgmr.msra.gmra.mxu2 %v242_v30 }
 0x1aa   :  { %v303_v40 = vpop.f32.mrf.mxu2 }
 0x1ab   :  { %v304_v41 = vadd.f32 %v565_v39, %v303_v40 }
 0x1ad   :  { %v497_v42 = vmul.f32 -1.442695, %v304_v41 }
 0x1af   :  { %569 = vpow2.f32 %v497_v42 }
 0x1b2   :  { %v305_v43 = vpop.f32.mrf.mxu2 }
 0x1b5   :  { %v570_v44 = vpop.eup %569 }
 0x1b6   :  { %v310_v45 = vadd.f32 1.0, %v570_v44 }
 0x1b8   :  { %571 = vrcp.f32 %v310_v45  ;;  %v322_v49 = vand.u32 2147483648, %v310_v45  ;;  %v320_v51 = vand.u32 2147483647, %v310_v45  ;;  %vm316_vm2 = vweird.f32 %v310_v45 }
 0x1ba   :  { %v323_v53 = vor.u32 1.1754944e-38, %v322_v49  ;;  %vm321_vm4 = vcmp.eq.f32.partialorder %v320_v51, 8.507059e+37 }
 0x1be   :  { %v572_v46 = vpop.eup %571 }
 0x1bf   :  { %v312_v47 = vmul.f32 %v572_v46, %v310_v45  ;;  %vm317_vm1 = vweird.f32 %v572_v46 }
 0x1c0   :  { %vm318_vm3 = vmor %vm316_vm2, %vm317_vm1 }
 0x1c1   :  { %v313_v48 = vsub.f32 1.0, %v312_v47 }
 0x1c3   :  { %v314_v50 = vmul.f32 %v572_v46, %v313_v48 }
 0x1c5   :  { %v315_v52 = vadd.f32 %v572_v46, %v314_v50 }
 0x1c7   :  { %v319_v54 = vsel %vm318_vm3, %v572_v46, %v315_v52 }
 0x1c8   :  { %v324_v55 = vsel %vm321_vm4, %v323_v53, %v319_v54 }
 0x1c9   :  { %v343_v56 = vpack.c.bf16 %v324_v55, %v324_v55 }
 0x1cb   :  { %403 = vmatmul.bf16.vlgmr.msra.gmra.mxu3 %v343_v56 }
 0x24e   :  { %v404_v58 = vpop.f32.mrf.mxu3 }
 0x24f   :  { %v405_v59 = vadd.f32 %v566_v57, %v404_v58 }
 0x251   :  { %408 = vst [vmem:[#allocation11] sm:$0xff] %v405_v59 }
 0x252   :  { %419 = dma.vmem_to_hbm [thread:$0]  %s415_s16, 128, %s417_s19, [#allocation4]  }
 0x256   :  { %v406_v60 = vpop.f32.mrf.mxu3 }
 0x257   :  { %723 = dma.done.wait [#allocation4], 128  }
 0x258   :  { %724 = vsyncadd [#allocation4], 4294967168 }
 0x259   :  { %424 = vsyncpa [#allocation3], 1 }
 0x25a   :  { %425 = vsyncpa [#allocation6], 1 }
 0x25b   :  { %426 = vsyncpa [#allocation9], 1 }
 0x25c   :  { %427 = vsyncpa [#allocation4], 1 }

</bundles_post_ra>
